<compile_context>
chip_gen: v5e
topology: v5e:2x2
jax: 0.10.0
libtpu: 0.0.40
codegen_flags: <defaults>
</compile_context>

<pallas_src>
import functools

import jax
import jax.numpy as jnp
from jax.experimental import pallas as pl
from jax.experimental.pallas import tpu as pltpu


# ----------------------------------------------------------------------------
# Kernels
# ----------------------------------------------------------------------------
def _mxu_dot(x, w, *, use_bf16):
    if use_bf16:
        # bf16 MXU fast path (v6e/v7x), f32 accumulation.
        return jnp.dot(x.astype(jnp.bfloat16), w.astype(jnp.bfloat16),
                       preferred_element_type=jnp.float32)
    # Full-fidelity f32 path (matches torch.matmul on f32).
    return jnp.dot(x, w, preferred_element_type=jnp.float32,
                   precision=jax.lax.Precision.HIGHEST)


def _linear_relu_fullk_kernel(x_ref, w_ref, b_ref, o_ref, *, use_bf16):
    # Single K block: no reduction axis, no accumulator scratch.
    acc = _mxu_dot(x_ref[...], w_ref[...], use_bf16=use_bf16)
    o_ref[...] = jnp.maximum(acc + b_ref[...], 0.0).astype(o_ref.dtype)


def _linear_relu_ktiled_kernel(x_ref, w_ref, b_ref, o_ref, acc_ref, *, use_bf16):
    k = pl.program_id(2)

    @pl.when(k == 0)
    def _():
        # Seed the accumulator with the bias (saves a zero-store + epilogue add).
        acc_ref[...] = jnp.broadcast_to(
            b_ref[...].astype(jnp.float32), acc_ref.shape)

    acc_ref[...] += _mxu_dot(x_ref[...], w_ref[...], use_bf16=use_bf16)

    @pl.when(k == pl.num_programs(2) - 1)
    def _():
        o_ref[...] = jnp.maximum(acc_ref[...], 0.0).astype(o_ref.dtype)


# ----------------------------------------------------------------------------
# Tiling helpers
# ----------------------------------------------------------------------------
def _round_up(x, m):
    return (x + m - 1) // m * m


def _largest_divisor(total, cap, base):
    """Largest d <= cap with d % base == 0 and total % d == 0, else None."""
    d = (min(cap, total) // base) * base
    while d >= base:
        if total % d == 0:
            return d
        d -= base
    return None


# ----------------------------------------------------------------------------
# Wrapper
# ----------------------------------------------------------------------------
@functools.partial(
    jax.jit,
    static_argnames=("block_m_cap", "block_n_cap", "block_k_cap", "use_bf16"),
)
def my_linear_forward(x, weight, bias, *, block_m_cap=512, block_n_cap=512,
                      block_k_cap=2048, use_bf16=False):
    M, K = x.shape
    K2, N = weight.shape
    assert K == K2 and bias.shape == (N,)

    # --- N: pad to a multiple of 128 (lane-dense stores); tile = largest
    #     128-multiple divisor of padded N (never ragged, never too narrow).
    n_pad = _round_up(N, 128)
    block_n = _largest_divisor(n_pad, block_n_cap, 128) or 128

    # --- K: full-K residency when it fits (removes the reduction grid axis);
    #     otherwise a 128-multiple divisor of K so W is never pad-copied in HBM.
    if K <= block_k_cap:
        block_k, k_pad = K, K
    else:
        d = _largest_divisor(K, block_k_cap, 128)
        if d is not None:
            block_k, k_pad = d, K
        else:
            # TODO(synk): unavoidable K-padding copy; pre-pad/cache weights
            # outside the hot path if this layer shape is reused.
            block_k = block_k_cap
            k_pad = _round_up(K, block_k_cap)

    # --- M: single full-M block for small batches; else the largest 8-multiple
    #     divisor of M (avoids masked remainder tiles).
    if M <= block_m_cap:
        block_m = M
    else:
        block_m = _largest_divisor(M, block_m_cap, 8) or block_m_cap

    # --- Megacore (v7x): if both parallel axes collapsed to one block, split
    #     M (or N) into two equal blocks so both TensorCores get work.
    grid_m = pl.cdiv(M, block_m)
    grid_n = n_pad // block_n
    if grid_m == 1 and grid_n == 1:
        if M >= 256 and (M // 2) % 8 == 0:
            block_m = M // 2
        elif n_pad >= 256 and (n_pad // 2) % 128 == 0:
            block_n = n_pad // 2
    grid_m = pl.cdiv(M, block_m)
    grid_n = n_pad // block_n
    k_steps = k_pad // block_k

    # --- Wrapper-side zero padding (only when unavoidable).
    x_p, w_p, b_p = x, weight, bias
    if n_pad != N:
        w_p = jnp.pad(w_p, ((0, 0), (0, n_pad - N)))
        b_p = jnp.pad(b_p, ((0, n_pad - N),))
    if k_pad != K:
        x_p = jnp.pad(x_p, ((0, 0), (0, k_pad - K)))
        w_p = jnp.pad(w_p, ((0, k_pad - K), (0, 0)))
    b2d = b_p.reshape(1, n_pad)

    vmem_limit = 32 * 1024 * 1024  # safe on v7x (64 MiB physical) and v5e/v6e

    if k_steps == 1:
        # Full-K residency: 2-D grid, no accumulator, bias+ReLU in the epilogue.
        out_padded = pl.pallas_call(
            functools.partial(_linear_relu_fullk_kernel, use_bf16=use_bf16),
            out_shape=jax.ShapeDtypeStruct((M, n_pad), x.dtype),
            grid_spec=pltpu.PrefetchScalarGridSpec(
                num_scalar_prefetch=0,
                grid=(grid_m, grid_n),
                in_specs=[
                    pl.BlockSpec((block_m, block_k), lambda i, j: (i, 0)),
                    pl.BlockSpec((block_k, block_n), lambda i, j: (0, j)),
                    pl.BlockSpec((1, block_n), lambda i, j: (0, j)),
                ],
                out_specs=pl.BlockSpec((block_m, block_n), lambda i, j: (i, j)),
            ),
            compiler_params=pltpu.CompilerParams(
                dimension_semantics=("parallel", "parallel"),
                vmem_limit_bytes=vmem_limit,
            ),
        )(x_p, w_p, b2d)
    else:
        # Tiled contraction: K innermost ("arbitrary") with f32 VMEM accumulator.
        out_padded = pl.pallas_call(
            functools.partial(_linear_relu_ktiled_kernel, use_bf16=use_bf16),
            out_shape=jax.ShapeDtypeStruct((M, n_pad), x.dtype),
            grid_spec=pltpu.PrefetchScalarGridSpec(
                num_scalar_prefetch=0,
                grid=(grid_m, grid_n, k_steps),
                in_specs=[
                    pl.BlockSpec((block_m, block_k), lambda i, j, k: (i, k)),
                    pl.BlockSpec((block_k, block_n), lambda i, j, k: (k, j)),
                    pl.BlockSpec((1, block_n), lambda i, j, k: (0, j)),
                ],
                out_specs=pl.BlockSpec((block_m, block_n), lambda i, j, k: (i, j)),
                scratch_shapes=[pltpu.VMEM((block_m, block_n), jnp.float32)],
            ),
            compiler_params=pltpu.CompilerParams(
                dimension_semantics=("parallel", "parallel", "arbitrary"),
                vmem_limit_bytes=vmem_limit,
            ),
        )(x_p, w_p, b2d)

    # NOTE: this slice is an extra HBM read/write; a consumer that accepts
    # padded-N output (or fuses the slice) can skip it.
    return out_padded[:, :N] if n_pad != N else out_padded


def reference_forward(x, weight, bias):
    return jnp.maximum(
        jnp.matmul(x, weight, precision=jax.lax.Precision.HIGHEST) + bias, 0.0
    )


if __name__ == "__main__":
    key = jax.random.PRNGKey(0)

    # --- Module-faithful small case: MyLinear(32, 64), batch of 8 -----------
    batch, n_input, n_output = 8, 32, 64
    kx, kw, k2 = jax.random.split(key, 3)
    x = jax.random.normal(kx, (batch, n_input), dtype=jnp.float32)
    weight = jax.random.normal(kw, (n_input, n_output), dtype=jnp.float32)
    bias = jnp.zeros((n_output,), dtype=jnp.float32)  # module init: zeros

    out = jax.block_until_ready(my_linear_forward(x, weight, bias))
    ref = reference_forward(x, weight, bias)
    assert out.shape == (batch, n_output)
    assert jnp.allclose(out, ref, atol=1e-5, rtol=1e-5)

    # --- Larger case: full-K path, padded N, 2-way megacore M split ---------
    batch2, n_in2, n_out2 = 384, 1024, 192
    ka, kb, kc = jax.random.split(k2, 3)
    x2 = jax.random.normal(ka, (batch2, n_in2), dtype=jnp.float32)
    w2 = jax.random.normal(kb, (n_in2, n_out2), dtype=jnp.float32) * 0.05
    b2 = jax.random.normal(kc, (n_out2,), dtype=jnp.float32)

    out2 = jax.block_until_ready(my_linear_forward(x2, w2, b2))
    ref2 = reference_forward(x2, w2, b2)
    assert out2.shape == (batch2, n_out2)
    assert jnp.allclose(out2, ref2, atol=1e-2, rtol=1e-2)

    # --- Same shapes with a small K cap to exercise the K-tiled kernel path -
    out3 = jax.block_until_ready(
        my_linear_forward(x2, w2, b2, block_k_cap=256))
    assert out3.shape == (batch2, n_out2)
    assert jnp.allclose(out3, ref2, atol=1e-2, rtol=1e-2)

    print("KERNEL_OK")
</pallas_src>

<mosaic_0001>
module attributes {stable_mosaic.version = 11 : i64} {
  func.func @_linear_relu_fullk_kernel(%arg0: i32, %arg1: i32, %arg2: memref<8x32xf32, #tpu.memory_space<vmem>>, %arg3: memref<32x128xf32, #tpu.memory_space<vmem>>, %arg4: memref<1x128xf32, #tpu.memory_space<vmem>>, %arg5: memref<8x128xf32, #tpu.memory_space<vmem>>) attributes {dimension_semantics = [#tpu.dimension_semantics<parallel>, #tpu.dimension_semantics<parallel>], iteration_bounds = array<i64: 1, 1>, scalar_prefetch = 0 : i64, scratch_operands = 0 : i64, tpu.core_type = #tpu.core_type<tc>, window_params = [{transform_indices = @transform_0, window_bounds = array<i64: 8, 32>}, {transform_indices = @transform_1, window_bounds = array<i64: 32, 128>}, {transform_indices = @transform_2, window_bounds = array<i64: 1, 128>}, {transform_indices = @transform_3, window_bounds = array<i64: 8, 128>}]} {
    %c0 = arith.constant 0 : index
    %c0_0 = arith.constant 0 : index
    %0 = vector.load %arg2[%c0, %c0_0] : memref<8x32xf32, #tpu.memory_space<vmem>>, vector<8x32xf32>
    %c0_1 = arith.constant 0 : index
    %c0_2 = arith.constant 0 : index
    %1 = vector.load %arg3[%c0_1, %c0_2] : memref<32x128xf32, #tpu.memory_space<vmem>>, vector<32x128xf32>
    %cst = arith.constant dense<0.000000e+00> : vector<8x128xf32>
    %2 = tpu.matmul %0, %1, %cst {dimension_numbers = #tpu.dot_dimension_numbers<[1], [0], [0], [1], [0, 0, 1, 1], [], []>, precision = #tpu.contract_precision<fp32>} : vector<8x32xf32>, vector<32x128xf32>, vector<8x128xf32> -> vector<8x128xf32>
    %c0_3 = arith.constant 0 : index
    %c0_4 = arith.constant 0 : index
    %3 = vector.load %arg4[%c0_3, %c0_4] : memref<1x128xf32, #tpu.memory_space<vmem>>, vector<1x128xf32>
    %4 = vector.broadcast %3 : vector<1x128xf32> to vector<8x128xf32>
    %5 = arith.addf %2, %4 : vector<8x128xf32>
    %cst_5 = arith.constant 0.000000e+00 : f32
    %6 = vector.broadcast %cst_5 : f32 to vector<8x128xf32>
    %7 = arith.maximumf %5, %6 : vector<8x128xf32>
    %c0_6 = arith.constant 0 : index
    %c0_7 = arith.constant 0 : index
    %8 = vector.load %arg5[%c0_6, %c0_7] : memref<8x128xf32, #tpu.memory_space<vmem>>, vector<8x128xf32>
    tpu.vector_store %arg5[%c0_6, %c0_7], %7 {strides = array<i32>} : memref<8x128xf32, #tpu.memory_space<vmem>>, vector<8x128xf32>,
    return
  }
  func.func @transform_0(%arg0: i32, %arg1: i32) -> (i32, i32) {
    %c0_i32 = arith.constant 0 : i32
    %c0_i32_0 = arith.constant 0 : i32
    return %arg0, %c0_i32 : i32, i32
  }
  func.func @transform_1(%arg0: i32, %arg1: i32) -> (i32, i32) {
    %c0_i32 = arith.constant 0 : i32
    %c0_i32_0 = arith.constant 0 : i32
    return %c0_i32, %arg1 : i32, i32
  }
  func.func @transform_2(%arg0: i32, %arg1: i32) -> (i32, i32) {
    %c0_i32 = arith.constant 0 : i32
    %c0_i32_0 = arith.constant 0 : i32
    return %c0_i32, %arg1 : i32, i32
  }
  func.func @transform_3(%arg0: i32, %arg1: i32) -> (i32, i32) {
    %c0_i32 = arith.constant 0 : i32
    return %arg0, %arg1 : i32, i32
  }
}

</mosaic_0001>

<bundles_post_ra>
// kernel: my_linear_forward.1
= control target key start
LH: loop header
LB: loop body
LE: loop exit
PB: predicated region body
PF: predicated region fallthrough
CT: control target
= control target key end

     0   :  { %vm24_vm0 = vcmask 261120   ;;  %s301_s0 = inlined_call_operand.vmem [shape: f32[8,32], index: 0, kind: input, shape index: {}]   ;;  %s302_s1 = inlined_call_operand.vmem [shape: f32[32,128], index: 1, kind: input, shape index: {}]   ;;  %s303_s2 = inlined_call_operand.vmem [shape: f32[1,128], index: 2, kind: input, shape index: {}]   ;;  %s304_s3 = inlined_call_operand.hbm [shape: f32[8,128], index: 3, kind: output, shape index: {}]  }
   0x1   :  { %v19_v0 = vld [vmem:[%s302_s1 + $0x18] sm:$0xff]  ;;  %v18_v1 = vld [vmem:[%s302_s1 + $0x10] sm:$0xff]  ;;  %v17_v2 = vld [vmem:[%s302_s1 + $0x8] sm:$0xff] }
   0x2   :  { %v40_v3 = vand.u32 4294901760, %v19_v0  ;;  %v42_v4 = vand.u32 4294901760, %v18_v1  ;;  %v44_v5 = vand.u32 4294901760, %v17_v2  ;;  %v16_v6 = vld [vmem:[%s302_s1] sm:$0xff] }
   0x3   :  { %v15_v7 = vld [vmem:[%s301_s0] sm:$0xff]  ;;  %v46_v8 = vand.u32 4294901760, %v16_v6 }
   0x4   :  { %v26_v9 = vsel %vm24_vm0, %v15_v7, 0  ;;  %v70_v10 = vsub.f32 %v19_v0, %v40_v3  ;;  %41 = vmatpush.msra.mxu0 %v40_v3  ;;  %v76_v11 = vsub.f32 %v18_v1, %v42_v4  ;;  %141 = vmatpush.msra.mxu3 %v40_v3  ;;  %v82_v12 = vsub.f32 %v17_v2, %v44_v5 }
   0x5   :  { %v48_v13 = vand.u32 4294901760, %v26_v9 }
   0x6   :  { %8 = vsyncpa [#allocation3], 0  ;;  %v88_v14 = vsub.f32 %v16_v6, %v46_v8  ;;  %112 = vmatpush.msra.mxu2 %v70_v10  ;;  %43 = vmatpush.msra.mxu0 %v42_v4  ;;  %v71_v15 = vand.u32 4294901760, %v70_v10  ;;  %v77_v16 = vand.u32 4294901760, %v76_v11  ;;  %v83_v18 = vand.u32 4294901760, %v82_v12  ;;  %s259_s22 = smov [#allocation2]  }
   0x7   :  { %v49_v17 = vsub.f32 %v26_v9, %v48_v13  ;;  %143 = vmatpush.msra.mxu3 %v42_v4  ;;  %v232_v31 = vld [vmem:[%s303_s2] ss:$0 sm:$0xff]  ;;  %s220_s23 = sshll.u32 %s259_s22, 4  ;;  %s222_s26 = sshll.u32 %s304_s3, 4  ;;  %s221_s23 = int_to_ptr.vmem [resolvable:$true] %s220_s23  ;;  %s223_s26 = int_to_ptr.hbm [resolvable:$true] %s222_s26 }
   0x8   :  { %v89_v19 = vand.u32 4294901760, %v88_v14  ;;  %115 = vmatpush.msra.mxu2 %v76_v11  ;;  %v72_v20 = vsub.f32 %v70_v10, %v71_v15  ;;  %45 = vmatpush.msra.mxu0 %v44_v5  ;;  %v78_v21 = vsub.f32 %v76_v11, %v77_v16  ;;  %v84_v22 = vsub.f32 %v82_v12, %v83_v18 }
   0x9   :  { %v50_v23 = vand.u32 4294901760, %v49_v17  ;;  %145 = vmatpush.msra.mxu3 %v44_v5 }
   0xa   :  { %v73_v24 = vand.u32 4294901760, %v72_v20  ;;  %118 = vmatpush.msra.mxu2 %v82_v12  ;;  %v79_v25 = vand.u32 4294901760, %v78_v21  ;;  %47 = vmatpush.msra.mxu0 %v46_v8  ;;  %v90_v27 = vsub.f32 %v88_v14, %v89_v19  ;;  %v85_v28 = vand.u32 4294901760, %v84_v22 }
   0xb   :  { %v51_v26 = vsub.f32 %v49_v17, %v50_v23  ;;  %147 = vmatpush.msra.mxu3 %v46_v8 }
   0xc   :  { %170 = vmatpush.msrb.mxu0 %v71_v15  ;;  %74 = vmatpush.msra.mxu1 %v73_v24  ;;  %v91_v30 = vand.u32 4294901760, %v90_v27 }
   0xd   :  { %121 = vmatpush.msra.mxu2 %v88_v14  ;;  %v52_v29 = vand.u32 4294901760, %v51_v26  ;;  %151 = vmatmul.f32.vlgmr.msra.gmra.mxu3 %v50_v23 }
   0xe   :  { %124 = vmatmul.f32.vlgmr.msra.gmra.mxu2 %v49_v17  ;;  %80 = vmatpush.msra.mxu1 %v79_v25 }
   0xf   :  { %53 = vmatmul.f32.vlgmr.msra.gmra.mxu0 %v52_v29 }
  0x10   :  { %174 = vmatpush.msrb.mxu0 %v77_v16  ;;  %86 = vmatpush.msra.mxu1 %v85_v28 }
  0x12   :  { %178 = vmatpush.msrb.mxu0 %v83_v18  ;;  %92 = vmatpush.msra.mxu1 %v91_v30 }
  0x13   :  { %94 = vmatmul.f32.vlgmr.msra.gmra.mxu1 %v48_v13 }
  0x14   :  { %182 = vmatpush.msrb.mxu0 %v89_v19  ;;  %201 = vmatpush.msrb.mxu1 %v40_v3 }
  0x16   :  { %203 = vmatpush.msrb.mxu1 %v42_v4 }
  0x17   :  { %184 = vmatmul.f32.vlgmr.msrb.gmra.mxu0 %v48_v13 }
  0x18   :  { %205 = vmatpush.msrb.mxu1 %v44_v5 }
  0x1a   :  { %207 = vmatpush.msrb.mxu1 %v46_v8 }
  0x1b   :  { %209 = vmatmul.f32.vlgmr.msrb.gmra.mxu1 %v48_v13 }
  0x8c   :  { %v54_v32 = vpop.f32.mrf.mxu0 }
  0x8d   :  { %v55_v33 = vadd.f32 %v232_v31, %v54_v32 }
  0x90   :  { %v95_v34 = vpop.f32.mrf.mxu1  ;;  %v152_v37 = vpop.f32.mrf.mxu3 }
  0x91   :  { %v125_v35 = vpop.f32.mrf.mxu2  ;;  %v96_v36 = vadd.f32 %v95_v34, %v55_v33 }
  0x93   :  { %v126_v38 = vadd.f32 %v125_v35, %v96_v36 }
  0x94   :  { %v185_v39 = vpop.f32.mrf.mxu0 }
  0x95   :  { %v153_v40 = vadd.f32 %v152_v37, %v126_v38 }
  0x97   :  { %v186_v41 = vadd.f32 %v185_v39, %v153_v40 }
  0x98   :  { %v210_v42 = vpop.f32.mrf.mxu1 }
  0x99   :  { %v211_v43 = vadd.f32 %v210_v42, %v186_v41 }
  0x9b   :  { %v213_v44 = vmax.f32 %v211_v43, 0.0 }
  0x9d   :  { %214 = vst [vmem:[#allocation2] sm:$0xff] %v213_v44 }
  0x9e   :  { %225 = dma.vmem_to_hbm [thread:$0]  %s221_s23, 128, %s223_s26, [#allocation3]  }
  0x9f   :  { %257 = dma.done.wait [#allocation3], 128  }
  0xa0   :  { %258 = vsyncadd [#allocation3], 4294967168 }
  0xa1   :  { %230 = vsyncpa [#allocation3], 1 }

</bundles_post_ra>
